<compile_context>
chip_gen: v5e
topology: v5e:2x2
jax: 0.10.0
libtpu: 0.0.40
codegen_flags: <defaults>
</compile_context>

<pallas_src>
import jax
import jax.numpy as jnp
from jax.experimental import pallas as pl
from jax.experimental.pallas import tpu as pltpu

LANES = 128


def _round_up(x, m):
    return ((x + m - 1) // m) * m


def _cdiv(a, b):
    return -(-a // b)


def _sublane_multiple(itemsize):
    # packed-sublane multiple: f32 -> 8, bf16/f16 -> 16, int8/fp8 -> 32
    return max(8, (4 // max(1, int(itemsize))) * 8)


def _num_tensorcores():
    """Best-effort TensorCore count per chip; wrong guesses stay correct."""
    try:
        info = pltpu.get_tpu_info()
        for name in ("num_cores", "core_count", "num_tensorcores",
                     "tensor_core_count", "cores_per_chip"):
            v = getattr(info, name, None)
            if isinstance(v, int) and 1 <= v <= 8:
                return v
    except Exception:
        pass
    try:
        kind = jax.devices()[0].device_kind.lower()
        if any(t in kind for t in ("v7", "v5p", "v4")):
            return 2
    except Exception:
        pass
    return 1


def _make_kernel(n, tr, rows_kernel, tiles_per_split, inv_total, need_mask):
    def kernel(*refs):
        o_refs = refs[:n]
        y_ref = refs[n]
        out_ref = refs[n + 1]
        acc_ref = refs[n + 2]

        r = pl.program_id(1)

        yv = y_ref[...].astype(jnp.float32)
        contrib = None
        for o_ref in o_refs:  # small static N -> unrolled, pure VPU work
            d = o_ref[...].astype(jnp.float32) - yv
            sq = d * d
            contrib = sq if contrib is None else contrib + sq

        if need_mask:
            # Zero out rows past the real data: covers the partial last tile
            # and any phantom (clamped) tiles on the parallel split.
            tile_idx = pl.program_id(0) * tiles_per_split + r
            row_ids = (jax.lax.broadcasted_iota(jnp.int32, (tr, LANES), 0)
                       + tile_idx * tr)
            contrib = jnp.where(row_ids < rows_kernel, contrib, 0.0)

        # First step writes directly (saves the zero-init store+load).
        @pl.when(r == 0)
        def _():
            acc_ref[...] = contrib

        @pl.when(r != 0)
        def _():
            acc_ref[...] = acc_ref[...] + contrib

        @pl.when(r == pl.num_programs(1) - 1)
        def _():
            # single cross-lane/sublane reduce, paid once per split
            out_ref[0, 0] = jnp.sum(acc_ref[...]) * jnp.float32(inv_total)

    return kernel


def shadow_loss(outputs, y):
    """Mean over outputs of MSE(output, y). Each output has the same shape as y."""
    outputs = list(outputs)
    n = len(outputs)
    assert n >= 1
    for o in outputs:
        assert o.shape == y.shape, (o.shape, y.shape)

    numel = y.size
    inv_total = 1.0 / (n * numel)

    rows_full = numel // LANES
    rem = numel - rows_full * LANES

    flats = [o.reshape(-1) for o in outputs]
    y_flat = y.reshape(-1)

    # ---- sub-128-element tail: plain JAX (at most 127*(n+1) elements) ------
    tail_loss = jnp.float32(0.0)
    if rem > 0:
        y_tail = y_flat[rows_full * LANES:].astype(jnp.float32)
        tail_sse = jnp.float32(0.0)
        for f in flats:
            d = f[rows_full * LANES:].astype(jnp.float32) - y_tail
            tail_sse = tail_sse + jnp.sum(d * d)
        tail_loss = tail_sse * jnp.float32(inv_total)

    if rows_full == 0:
        # Degenerate tiny input: everything fit in the tail.
        return tail_loss

    # ---- lane-dense (rows_full, 128) slabs (zero-copy when numel % 128 == 0) --
    def to_slab(f):
        if rem > 0:
            # TODO(synk): for unaligned numel the prefix slice may still copy;
            # a manual-DMA path over the raw 1-D HBM buffer would avoid it.
            f = f[: rows_full * LANES]
        return f.reshape(rows_full, LANES)

    slabs = [to_slab(f) for f in flats] + [to_slab(y_flat)]

    # ---- tiling / VMEM budgeting --------------------------------------------
    itemsizes = [jnp.dtype(s.dtype).itemsize for s in slabs]
    sub = max(_sublane_multiple(it) for it in itemsizes)
    n_cores = _num_tensorcores()

    # VMEM bytes per tile-row: (n+1) double-buffered input rows + f32 acc row.
    per_row_bytes = sum(2 * LANES * it for it in itemsizes) + LANES * 4
    HARD_VMEM_CAP = 40 * 1024 * 1024  # stays well under v7x's 64 MiB physical/TC
    tr_cap = max(sub, (HARD_VMEM_CAP // per_row_bytes) // sub * sub)
    # Keep tiles large (HBM roofline falls off below ~512 rows); spend VMEM
    # (explicit vmem_limit_bytes below) rather than shrinking the tile.
    tr_max = min(1024, tr_cap)

    if rows_full <= tr_max:
        if n_cores > 1 and rows_full >= 1024:
            # split one large tile across both TensorCores
            tr = _round_up(_cdiv(rows_full, n_cores), sub)
        else:
            tr = _round_up(rows_full, sub)
    else:
        tr = tr_max

    n_tiles = _cdiv(rows_full, tr)
    n_splits = n_cores if (n_cores > 1 and n_tiles >= 2) else 1
    tiles_per_split = _cdiv(n_tiles, n_splits)

    covered_rows = n_splits * tiles_per_split * tr
    need_mask = covered_rows != rows_full

    if n_splits * tiles_per_split == n_tiles:
        row_map = lambda c, r: (c * tiles_per_split + r, 0)
    else:
        last_tile = n_tiles - 1
        row_map = lambda c, r: (jnp.minimum(c * tiles_per_split + r, last_tile), 0)

    vmem_limit = int(min(tr * per_row_bytes + (8 << 20), 48 << 20))

    cost = pl.CostEstimate(
        flops=3 * n * rows_full * LANES,
        transcendentals=0,
        bytes_accessed=sum(rows_full * LANES * it for it in itemsizes) + 4 * n_splits,
    )

    kernel = _make_kernel(n, tr, rows_full, tiles_per_split, inv_total, need_mask)

    partials = pl.pallas_call(
        kernel,
        out_shape=jax.ShapeDtypeStruct((n_splits, 1), jnp.float32),
        grid_spec=pltpu.PrefetchScalarGridSpec(
            num_scalar_prefetch=0,
            grid=(n_splits, tiles_per_split),
            in_specs=[pl.BlockSpec((tr, LANES), row_map) for _ in range(n + 1)],
            out_specs=pl.BlockSpec(
                (1, 1), lambda c, r: (c, 0),
                memory_space=pltpu.MemorySpace.SMEM,
            ),
            scratch_shapes=[pltpu.VMEM((tr, LANES), jnp.float32)],
        ),
        compiler_params=pltpu.CompilerParams(
            dimension_semantics=("parallel", "arbitrary"),
            vmem_limit_bytes=vmem_limit,
        ),
        cost_estimate=cost,
    )(*slabs)

    # n_splits partial (already scaled) sums + plain-JAX tail -> final loss
    return jnp.sum(partials) + tail_loss


if __name__ == "__main__":
    key = jax.random.PRNGKey(0)
    k1, k2, k3, ky = jax.random.split(key, 4)

    shape = (2, 4, 16, 16)  # NCHW, matches the module's conv-style inputs
    outputs = [
        jax.random.normal(k1, shape, dtype=jnp.float32),
        jax.random.normal(k2, shape, dtype=jnp.float32),
        jax.random.normal(k3, shape, dtype=jnp.float32),
    ]
    y = jax.random.normal(ky, shape, dtype=jnp.float32)

    loss = shadow_loss(outputs, y)
    jax.block_until_ready(loss)

    # reference (plain JAX) check
    ref = jnp.mean(jnp.stack([jnp.mean((o - y) ** 2) for o in outputs]))
    assert jnp.allclose(loss, ref, rtol=1e-5, atol=1e-6), (loss, ref)

    print("KERNEL_OK")
</pallas_src>

<mosaic_0001>
module attributes {stable_mosaic.version = 11 : i64} {
  func.func @kernel(%arg0: i32, %arg1: i32, %arg2: memref<16x128xf32, #tpu.memory_space<vmem>>, %arg3: memref<16x128xf32, #tpu.memory_space<vmem>>, %arg4: memref<16x128xf32, #tpu.memory_space<vmem>>, %arg5: memref<16x128xf32, #tpu.memory_space<vmem>>, %arg6: memref<1x1xf32, #tpu.memory_space<smem>>, %arg7: memref<16x128xf32, #tpu.memory_space<vmem>>) attributes {dimension_semantics = [#tpu.dimension_semantics<parallel>, #tpu.dimension_semantics<arbitrary>], iteration_bounds = array<i64: 1, 1>, scalar_prefetch = 0 : i64, scratch_operands = 1 : i64, tpu.core_type = #tpu.core_type<tc>, window_params = [{transform_indices = @transform_0, window_bounds = array<i64: 16, 128>}, {transform_indices = @transform_1, window_bounds = array<i64: 16, 128>}, {transform_indices = @transform_2, window_bounds = array<i64: 16, 128>}, {transform_indices = @transform_3, window_bounds = array<i64: 16, 128>}, {transform_indices = @transform_4, window_bounds = array<i64: 1, 1>}]} {
    %c0 = arith.constant 0 : index
    %c0_0 = arith.constant 0 : index
    %0 = vector.load %arg5[%c0, %c0_0] : memref<16x128xf32, #tpu.memory_space<vmem>>, vector<16x128xf32>
    %c0_1 = arith.constant 0 : index
    %c0_2 = arith.constant 0 : index
    %1 = vector.load %arg2[%c0_1, %c0_2] : memref<16x128xf32, #tpu.memory_space<vmem>>, vector<16x128xf32>
    %2 = arith.subf %1, %0 : vector<16x128xf32>
    %3 = arith.mulf %2, %2 : vector<16x128xf32>
    %c0_3 = arith.constant 0 : index
    %c0_4 = arith.constant 0 : index
    %4 = vector.load %arg3[%c0_3, %c0_4] : memref<16x128xf32, #tpu.memory_space<vmem>>, vector<16x128xf32>
    %5 = arith.subf %4, %0 : vector<16x128xf32>
    %6 = arith.mulf %5, %5 : vector<16x128xf32>
    %7 = arith.addf %3, %6 : vector<16x128xf32>
    %c0_5 = arith.constant 0 : index
    %c0_6 = arith.constant 0 : index
    %8 = vector.load %arg4[%c0_5, %c0_6] : memref<16x128xf32, #tpu.memory_space<vmem>>, vector<16x128xf32>
    %9 = arith.subf %8, %0 : vector<16x128xf32>
    %10 = arith.mulf %9, %9 : vector<16x128xf32>
    %11 = arith.addf %7, %10 : vector<16x128xf32>
    %c0_i32 = arith.constant 0 : i32
    %12 = arith.cmpi eq, %arg1, %c0_i32 : i32
    %13 = arith.extui %12 : i1 to i32
    %c0_i32_7 = arith.constant 0 : i32
    %14 = arith.cmpi ne, %13, %c0_i32_7 : i32
    scf.if %14 {
      %c0_12 = arith.constant 0 : index
      %c0_13 = arith.constant 0 : index
      %21 = vector.load %arg7[%c0_12, %c0_13] : memref<16x128xf32, #tpu.memory_space<vmem>>, vector<16x128xf32>
      tpu.vector_store %arg7[%c0_12, %c0_13], %11 {strides = array<i32>} : memref<16x128xf32, #tpu.memory_space<vmem>>, vector<16x128xf32>,
    } else {
    }
    %c0_i32_8 = arith.constant 0 : i32
    %15 = arith.cmpi ne, %arg1, %c0_i32_8 : i32
    %16 = arith.extui %15 : i1 to i32
    %c0_i32_9 = arith.constant 0 : i32
    %17 = arith.cmpi ne, %16, %c0_i32_9 : i32
    scf.if %17 {
      %c0_12 = arith.constant 0 : index
      %c0_13 = arith.constant 0 : index
      %21 = vector.load %arg7[%c0_12, %c0_13] : memref<16x128xf32, #tpu.memory_space<vmem>>, vector<16x128xf32>
      %22 = arith.addf %21, %11 : vector<16x128xf32>
      %c0_14 = arith.constant 0 : index
      %c0_15 = arith.constant 0 : index
      %23 = vector.load %arg7[%c0_14, %c0_15] : memref<16x128xf32, #tpu.memory_space<vmem>>, vector<16x128xf32>
      tpu.vector_store %arg7[%c0_14, %c0_15], %22 {strides = array<i32>} : memref<16x128xf32, #tpu.memory_space<vmem>>, vector<16x128xf32>,
    } else {
    }
    %c0_i32_10 = arith.constant 0 : i32
    %18 = arith.cmpi eq, %arg1, %c0_i32_10 : i32
    %19 = arith.extui %18 : i1 to i32
    %c0_i32_11 = arith.constant 0 : i32
    %20 = arith.cmpi ne, %19, %c0_i32_11 : i32
    scf.if %20 {
      %c0_12 = arith.constant 0 : index
      %c0_13 = arith.constant 0 : index
      %21 = vector.load %arg7[%c0_12, %c0_13] : memref<16x128xf32, #tpu.memory_space<vmem>>, vector<16x128xf32>
      %22 = vector.shape_cast %21 : vector<16x128xf32> to vector<1x16x128xf32>
      %cst = arith.constant dense<0.000000e+00> : vector<1xf32>
      %23 = vector.multi_reduction <add>, %22, %cst [1, 2] : vector<1x16x128xf32> to vector<1xf32>
      %24 = vector.shape_cast %23 : vector<1xf32> to vector<1x1x1xf32>
      %25 = vector.extract %24[0, 0, 0] : f32 from vector<1x1x1xf32>
      %cst_14 = arith.constant 1.62760422E-4 : f32
      %26 = arith.mulf %25, %cst_14 : f32
      %c0_15 = arith.constant 0 : index
      %c0_16 = arith.constant 0 : index
      %27 = memref.load %arg6[%c0_15, %c0_16] : memref<1x1xf32, #tpu.memory_space<smem>>
      memref.store %26, %arg6[%c0_15, %c0_16] : memref<1x1xf32, #tpu.memory_space<smem>>
    } else {
    }
    return
  }
  func.func @transform_0(%arg0: i32, %arg1: i32) -> (i32, i32) {
    %c1_i32 = arith.constant 1 : i32
    %0 = arith.muli %arg0, %c1_i32 : i32
    %1 = arith.addi %0, %arg1 : i32
    %c0_i32 = arith.constant 0 : i32
    %c0_i32_0 = arith.constant 0 : i32
    return %1, %c0_i32 : i32, i32
  }
  func.func @transform_1(%arg0: i32, %arg1: i32) -> (i32, i32) {
    %c1_i32 = arith.constant 1 : i32
    %0 = arith.muli %arg0, %c1_i32 : i32
    %1 = arith.addi %0, %arg1 : i32
    %c0_i32 = arith.constant 0 : i32
    %c0_i32_0 = arith.constant 0 : i32
    return %1, %c0_i32 : i32, i32
  }
  func.func @transform_2(%arg0: i32, %arg1: i32) -> (i32, i32) {
    %c1_i32 = arith.constant 1 : i32
    %0 = arith.muli %arg0, %c1_i32 : i32
    %1 = arith.addi %0, %arg1 : i32
    %c0_i32 = arith.constant 0 : i32
    %c0_i32_0 = arith.constant 0 : i32
    return %1, %c0_i32 : i32, i32
  }
  func.func @transform_3(%arg0: i32, %arg1: i32) -> (i32, i32) {
    %c1_i32 = arith.constant 1 : i32
    %0 = arith.muli %arg0, %c1_i32 : i32
    %1 = arith.addi %0, %arg1 : i32
    %c0_i32 = arith.constant 0 : i32
    %c0_i32_0 = arith.constant 0 : i32
    return %1, %c0_i32 : i32, i32
  }
  func.func @transform_4(%arg0: i32, %arg1: i32) -> (i32, i32) {
    %c0_i32 = arith.constant 0 : i32
    %c0_i32_0 = arith.constant 0 : i32
    return %arg0, %c0_i32 : i32, i32
  }
}

</mosaic_0001>

<bundles_post_ra>
// kernel: tpu_custom_call.1
= control target key start
LH: loop header
LB: loop body
LE: loop exit
PB: predicated region body
PF: predicated region fallthrough
CT: control target
= control target key end

     0   :  { %9 = vsyncpa [#allocation4], 0  ;;  %s353_s0 = inlined_call_operand.hbm [shape: f32[16,128], index: 0, kind: input, shape index: {}]   ;;  %s354_s1 = inlined_call_operand.hbm [shape: f32[16,128], index: 1, kind: input, shape index: {}]   ;;  %s355_s2 = inlined_call_operand.hbm [shape: f32[16,128], index: 2, kind: input, shape index: {}]   ;;  %s356_s3 = inlined_call_operand.hbm [shape: f32[16,128], index: 3, kind: input, shape index: {}]   ;;  %s357_s4 = inlined_call_operand.hbm [shape: f32[1,1], index: 4, kind: output, shape index: {}]  }
   0x1   :  { %10 = vsyncpa [#allocation7], 0 }
   0x2   :  { %11 = vsyncpa [#allocation10], 0 }
   0x3   :  { %12 = vsyncpa [#allocation5], 0  ;;  %s38_s17 = sshll.u32 %s354_s1, 4  ;;  %s306_s18 = smov [#allocation6]   ;;  %s39_s17 = int_to_ptr.hbm [resolvable:$true] %s38_s17 }
   0x4   :  { %s40_s19 = sshll.u32 %s306_s18, 4  ;;  %s21_s22 = sshll.u32 %s353_s0, 4  ;;  %s41_s19 = int_to_ptr.vmem [resolvable:$true] %s40_s19  ;;  %s22_s22 = int_to_ptr.hbm [resolvable:$true] %s21_s22 }
   0x5   :  { %s307_s23 = smov 128   ;;  %s308_s24 = smov 8  }
   0x6   :  { %46 = dma.hbm_to_vmem [thread:$0]  %s39_s17, 256, %s41_s19, [#allocation7], %s307_s23, %s307_s23, %s308_s24  }
   0x7   :  { %s309_s25 = smov [#allocation3]   ;;  %s55_s29 = sshll.u32 %s355_s2, 4  ;;  %s56_s29 = int_to_ptr.hbm [resolvable:$true] %s55_s29 }
   0x8   :  { %s23_s26 = sshll.u32 %s309_s25, 4  ;;  %s72_s5 = sshll.u32 %s356_s3, 4  ;;  %s24_s26 = int_to_ptr.vmem [resolvable:$true] %s23_s26  ;;  %s73_s5 = int_to_ptr.hbm [resolvable:$true] %s72_s5 }
   0x9   :  { %29 = dma.hbm_to_vmem [thread:$0]  %s22_s22, 256, %s24_s26, [#allocation4], %s307_s23, %s307_s23, %s308_s24  }
   0xa   :  { %s310_s6 = smov [#allocation8]   ;;  %s311_s0 = smov [#allocation9]  }
   0xb   :  { %s57_s7 = sshll.u32 %s310_s6, 4  ;;  %s74_s8 = sshll.u32 %s311_s0, 4  ;;  %s58_s7 = int_to_ptr.vmem [resolvable:$true] %s57_s7  ;;  %s75_s8 = int_to_ptr.vmem [resolvable:$true] %s74_s8 }
   0xc   :  { %63 = dma.hbm_to_vmem [thread:$0]  %s56_s29, 256, %s58_s7, [#allocation7], %s307_s23, %s307_s23, %s308_s24  }
   0xd   :  { %80 = dma.hbm_to_vmem [thread:$0]  %s73_s5, 256, %s75_s8, [#allocation10], %s307_s23, %s307_s23, %s308_s24  }
   0xe   :  { %298 = dma.done.wait [#allocation4], 256  }
   0xf   :  { %299 = vsyncadd [#allocation4], 4294967040 }
  0x10   :  { %300 = dma.done.wait [#allocation7], 512  }
  0x11   :  { %301 = vsyncadd [#allocation7], 4294966784 }
  0x12   :  { %302 = dma.done.wait [#allocation10], 256  }
  0x13   :  { %303 = vsyncadd [#allocation10], 4294967040  ;;  %v105_v0 = vld [vmem:[#allocation9] sm:$0xff]  ;;  %v106_v1 = vld [vmem:[#allocation9 + $0x8] sm:$0xff]  ;;  %s168_s9 = sshll.u32 %s357_s4, 4  ;;  %s312_s12 = smov [#allocation11]   ;;  %s169_s9 = int_to_ptr.hbm [resolvable:$true] %s168_s9 }
  0x14   :  { %v107_v2 = vld [vmem:[#allocation3] sm:$0xff]  ;;  %v108_v3 = vld [vmem:[#allocation3 + $0x8] sm:$0xff]  ;;  %v113_v5 = vld [vmem:[#allocation6] sm:$0xff] }
  0x15   :  { %v109_v4 = vsub.f32 %v107_v2, %v105_v0  ;;  %v114_v6 = vld [vmem:[#allocation6 + $0x8] sm:$0xff]  ;;  %v110_v7 = vsub.f32 %v108_v3, %v106_v1  ;;  %v115_v8 = vsub.f32 %v113_v5, %v105_v0  ;;  %v121_v10 = vld [vmem:[#allocation8] sm:$0xff]  ;;  %v122_v11 = vld [vmem:[#allocation8 + $0x8] sm:$0xff] }
  0x16   :  { %v116_v9 = vsub.f32 %v114_v6, %v106_v1  ;;  %v123_v13 = vsub.f32 %v121_v10, %v105_v0  ;;  %v124_v14 = vsub.f32 %v122_v11, %v106_v1 }
  0x17   :  { %v111_v12 = vmul.f32 %v109_v4, %v109_v4  ;;  %v112_v15 = vmul.f32 %v110_v7, %v110_v7  ;;  %v117_v16 = vmul.f32 %v115_v8, %v115_v8 }
  0x18   :  { %v118_v17 = vmul.f32 %v116_v9, %v116_v9  ;;  %v125_v18 = vmul.f32 %v123_v13, %v123_v13  ;;  %v126_v19 = vmul.f32 %v124_v14, %v124_v14 }
  0x19   :  { %v119_v20 = vadd.f32 %v117_v16, %v111_v12 }
  0x1a   :  { %v120_v21 = vadd.f32 %v118_v17, %v112_v15 }
  0x1b   :  { %v127_v22 = vadd.f32 %v125_v18, %v119_v20 }
  0x1c   :  { %v128_v23 = vadd.f32 %v126_v19, %v120_v21 }
  0x1e   :  { %v150_v24 = vadd.f32 %v128_v23, %v127_v22 }
  0x20   :  { %151 = vadd.xlane.f32.xlu0 %v150_v24 }
  0x93   :  { %v152_v25 = vpop.xlane.xlu0 %151 }
  0x94   :  { %v153_v26 = vrot.slane %v152_v25, 4 }
  0x96   :  { %v154_v27 = vadd.f32 %v153_v26, %v152_v25 }
  0x98   :  { %v155_v28 = vrot.slane %v154_v27, 2 }
  0x9a   :  { %v156_v29 = vadd.f32 %v155_v28, %v154_v27 }
  0x9c   :  { %v157_v30 = vrot.slane %v156_v29, 1 }
  0x9e   :  { %v158_v31 = vadd.f32 %v157_v30, %v156_v29 }
  0xa0   :  { %181 = vpush %v158_v31 }
  0xd1   :  { %s182_s10 = spop %181 }
  0xd2   :  { %s160_s11 = smul.f32 0.00016276042, %s182_s10 }
  0xd4   :  { %162 = sst [smem:[#allocation11]] %s160_s11 }
  0xd5   :  { %171 = dma.smem_to_hbm %s312_s12, 16, %s169_s9, [#allocation5]  }
  0xd6   :  { %304 = dma.done.wait [#allocation5], 16  }
  0xd7   :  { %305 = vsyncadd [#allocation5], 4294967280 }
  0xd8   :  { %176 = sfence }
  0xd9   :  { %177 = vsyncpa [#allocation4], 1 }
  0xda   :  { %178 = vsyncpa [#allocation7], 1 }
  0xdb   :  { %179 = vsyncpa [#allocation10], 1 }
  0xdc   :  { %180 = vsyncpa [#allocation5], 1 }

</bundles_post_ra>
